<compile_context>
chip_gen: v6e
topology: v6e:2x2x1
jax: 0.10.0
libtpu: 0.0.40
codegen_flags: <defaults>
</compile_context>

<pallas_src>
import functools

import jax
import jax.numpy as jnp
from jax import lax
from jax.experimental import pallas as pl
from jax.experimental.pallas import tpu as pltpu


def _round_up(x, m):
    return (x + m - 1) // m * m


# ----------------------------------------------------------------------------
# Pallas kernel: one grid step == `time_chunk` LSTM steps of one batch block
# ----------------------------------------------------------------------------
def _lstm_chunk_kernel(g_ref, whh_hbm, h_ref, whh_scr, h_scr, c_scr, dma_sem,
                       *, time_chunk, hg, unroll):
    """Sequential LSTM recurrence over a (batch block, time chunk).

    g_ref   : (Tc, Bb, 4*Hg) VMEM   precomputed x_t @ W_ih^T + (b_ih + b_hh)
    whh_hbm : (Hg, 4*Hg)     HBM    recurrent weight (memory_space=pl.ANY)
    h_ref   : (Tc, Bb, Hg)   VMEM   hidden-state sequence output
    whh_scr : (Hg, 4*Hg)     VMEM   resident W_hh^T (single copy, staged once)
    h_scr   : (Bb, Hg)       VMEM   h carry across time chunks
    c_scr   : (Bb, Hg)       VMEM   c carry across time chunks
    dma_sem : DMA semaphore for the one-shot W_hh stage-in
    """
    t_id = pl.program_id(1)          # time-chunk index (innermost, sequential)

    @pl.when(t_id == 0)
    def _():
        # New batch block: zero carries and (re)stage W_hh into VMEM once.
        h_scr[...] = jnp.zeros_like(h_scr)
        c_scr[...] = jnp.zeros_like(c_scr)
        cp = pltpu.make_async_copy(whh_hbm, whh_scr, dma_sem)
        cp.start()
        cp.wait()

    def step(s, carry):
        h, c = carry
        # gates = G[t] + h @ W_hh^T  (the only work that must stay sequential)
        gates = g_ref[s] + jnp.dot(h, whh_scr[...],
                                   preferred_element_type=jnp.float32)
        i_g = jax.nn.sigmoid(gates[:, 0 * hg:1 * hg])
        f_g = jax.nn.sigmoid(gates[:, 1 * hg:2 * hg])
        g_g = jnp.tanh(gates[:, 2 * hg:3 * hg])
        o_g = jax.nn.sigmoid(gates[:, 3 * hg:4 * hg])

        c_new = f_g * c + i_g * g_g
        h_new = o_g * jnp.tanh(c_new)
        h_ref[s] = h_new
        return (h_new, c_new)

    # Carry h/c in vregs through the loop; touch scratch only once per chunk.
    h_fin, c_fin = lax.fori_loop(0, time_chunk, step,
                                 (h_scr[...], c_scr[...]), unroll=unroll)
    h_scr[...] = h_fin
    c_scr[...] = c_fin


# ----------------------------------------------------------------------------
# Parameter padding: per-gate width H -> Hg (smallest multiple of 32 >= H, so
# 4*Hg is a multiple of 128 lanes).  Padded lanes of the recurrence stay 0:
# padded gate inputs/bias/W_hh cols are 0 -> g=tanh(0)=0, c stays 0, h stays 0.
# ----------------------------------------------------------------------------
def _pad_params(params, hg):
    H = params["whh_T"].shape[0]

    def pad_gate_cols(w):  # (..., 4*H) -> (..., 4*Hg), zero-pad each gate block
        lead = w.shape[:-1]
        w4 = w.reshape(*lead, 4, H)
        w4 = jnp.pad(w4, [(0, 0)] * len(lead) + [(0, 0), (0, hg - H)])
        return w4.reshape(*lead, 4 * hg)

    wih_p = pad_gate_cols(params["wih_T"])                      # (D, 4Hg)
    whh_p = pad_gate_cols(params["whh_T"])                      # (H, 4Hg)
    whh_p = jnp.pad(whh_p, ((0, hg - H), (0, 0)))               # (Hg, 4Hg)
    b_p = pad_gate_cols(params["bih"] + params["bhh"])          # (1, 4Hg)
    wout_p = jnp.pad(params["wout_T"], ((0, hg - H), (0, 0)))   # (Hg, D)
    return wih_p, whh_p, b_p, wout_p


# ----------------------------------------------------------------------------
# Wrapper: big GEMM -> sequential Pallas recurrence -> big GEMM + mask
# ----------------------------------------------------------------------------
def lstm_pretrain_forward(x, lengths, params, *, time_chunk=None,
                          batch_block=None, use_bf16_gemms=False):
    """x: (B, T, D) fp32, lengths: (B,) int32 -> (B, T, D) fp32."""
    B, T, D = x.shape
    H = params["whh_T"].shape[0]

    # Per-gate compute width: H=32 -> Hg=32 (no padding at all).
    Hg = _round_up(H, 32)

    # Batch padding / blocking.  The batch grid axis is "parallel": on v7x
    # pass batch_block=ceil(B/2) (rounded to 8) to use both TensorCores.
    Bp = _round_up(B, 8)
    if batch_block is None:
        Bb = Bp
    else:
        Bb = min(_round_up(max(int(batch_block), 1), 8), Bp)
    Bp = _round_up(Bp, Bb)

    wih_p, whh_p, b_p, wout_p = _pad_params(params, Hg)
    x_p = x if Bp == B else jnp.pad(x, ((0, Bp - B), (0, 0), (0, 0)))

    # ---- pass 1: hoisted input projection (one MXU-friendly GEMM), time-major
    if use_bf16_gemms:
        gates_in = jnp.einsum("btd,dg->tbg", x_p.astype(jnp.bfloat16),
                              wih_p.astype(jnp.bfloat16),
                              preferred_element_type=jnp.float32) + b_p
    else:
        gates_in = jnp.einsum("btd,dg->tbg", x_p, wih_p,
                              preferred_element_type=jnp.float32) + b_p  # (T,Bp,4Hg)

    # ---- VMEM budgeting: per-generation time_chunk and vmem limit ----------
    ITEM = 4                                   # fp32 bytes
    g_step = Bb * 4 * Hg * ITEM                # one time step of the G stream
    o_step = Bb * Hg * ITEM                    # one time step of the h writeback
    fixed = Hg * 4 * Hg * ITEM + 2 * Bb * Hg * ITEM  # resident W_hh + carries

    try:  # physical VMEM per TensorCore (v5e/v6e 128 MiB, v7x 64 MiB)
        vmem_phys = int(getattr(pltpu.get_tpu_info(),
                                "vmem_capacity_bytes", 0)) or (64 << 20)
    except Exception:
        vmem_phys = 64 << 20                   # conservative fallback (v7x)
    budget = int(vmem_phys * 0.6)              # headroom for Mosaic internals

    if time_chunk is None:
        tc = (budget - fixed) // (2 * (g_step + o_step))   # double-buffered streams
        Tc = int(max(1, min(T, tc, 256)))
    else:
        Tc = int(max(1, min(int(time_chunk), T)))
    Tp = _round_up(T, Tc)
    if Tp != T:
        gates_in = jnp.pad(gates_in, ((0, Tp - T), (0, 0), (0, 0)))

    vmem_need = fixed + 2 * Tc * (g_step + o_step)
    vmem_limit = int(min(max(vmem_need + (4 << 20), 16 << 20),
                         int(vmem_phys * 0.85)))

    # Bounded unroll: full unroll only while register pressure stays small.
    unroll = int(min(Tc, 8)) if Hg <= 256 else int(min(Tc, 2))

    kernel = functools.partial(_lstm_chunk_kernel,
                               time_chunk=Tc, hg=Hg, unroll=unroll)

    # ---- pass 2: sequential recurrence in Pallas ---------------------------
    h_seq = pl.pallas_call(
        kernel,
        out_shape=jax.ShapeDtypeStruct((Tp, Bp, Hg), jnp.float32),
        grid_spec=pltpu.PrefetchScalarGridSpec(
            num_scalar_prefetch=0,
            grid=(Bp // Bb, Tp // Tc),            # (batch blocks, time chunks)
            in_specs=[
                pl.BlockSpec((Tc, Bb, 4 * Hg), lambda b, t: (t, b, 0)),  # G chunk
                pl.BlockSpec(memory_space=pl.ANY),   # W_hh stays in HBM; staged once
            ],
            out_specs=pl.BlockSpec((Tc, Bb, Hg), lambda b, t: (t, b, 0)),
            scratch_shapes=[
                pltpu.VMEM((Hg, 4 * Hg), jnp.float32),  # resident W_hh (single copy)
                pltpu.VMEM((Bb, Hg), jnp.float32),      # h carry
                pltpu.VMEM((Bb, Hg), jnp.float32),      # c carry
                pltpu.SemaphoreType.DMA(()),            # W_hh stage-in sem
            ],
        ),
        compiler_params=pltpu.CompilerParams(
            # batch blocks independent -> parallel; time is sequential.
            dimension_semantics=("parallel", "arbitrary"),
            vmem_limit_bytes=vmem_limit,
        ),
    )(gates_in, whh_p)

    h_seq = h_seq[:T, :B]                                        # (T, B, Hg)

    # ---- pass 3: hoisted output head + length mask -------------------------
    if use_bf16_gemms:
        pred = jnp.einsum("tbh,hd->btd", h_seq.astype(jnp.bfloat16),
                          wout_p.astype(jnp.bfloat16),
                          preferred_element_type=jnp.float32) + params["bout"]
    else:
        pred = jnp.einsum("tbh,hd->btd", h_seq, wout_p,
                          preferred_element_type=jnp.float32) + params["bout"]
    mask = (jnp.arange(T)[None, :] < lengths[:, None]).astype(pred.dtype)
    return pred * mask[:, :, None]


# ----------------------------------------------------------------------------
# Pure-JAX reference (same math, lax.scan) for correctness check
# ----------------------------------------------------------------------------
def lstm_pretrain_reference(x, lengths, params):
    B, T, D = x.shape
    H = params["whh_T"].shape[0]
    x_tm = jnp.transpose(x, (1, 0, 2))

    def step(carry, x_t):
        h, c = carry
        gates = (x_t @ params["wih_T"] + h @ params["whh_T"]
                 + params["bih"] + params["bhh"])
        i_g = jax.nn.sigmoid(gates[:, 0 * H:1 * H])
        f_g = jax.nn.sigmoid(gates[:, 1 * H:2 * H])
        g_g = jnp.tanh(gates[:, 2 * H:3 * H])
        o_g = jax.nn.sigmoid(gates[:, 3 * H:4 * H])
        c_new = f_g * c + i_g * g_g
        h_new = o_g * jnp.tanh(c_new)
        return (h_new, c_new), h_new

    init = (jnp.zeros((B, H), jnp.float32), jnp.zeros((B, H), jnp.float32))
    _, h_seq = jax.lax.scan(step, init, x_tm)                    # (T, B, H)
    pred = jnp.einsum("tbh,hd->tbd", h_seq, params["wout_T"]) + params["bout"]
    pred = jnp.transpose(pred, (1, 0, 2))                        # (B, T, D)
    mask = (jnp.arange(T)[None, :] < lengths[:, None]).astype(pred.dtype)
    return pred * mask[:, :, None]


# ----------------------------------------------------------------------------
# Deterministic parameter init (shapes follow nn.LSTM / nn.Linear, gate order
# i, f, g, o as in PyTorch)
# ----------------------------------------------------------------------------
def init_params(key, input_dim, hidden_dim):
    ks = jax.random.split(key, 6)
    scale = 1.0 / jnp.sqrt(hidden_dim)
    u = lambda k, shape: jax.random.uniform(k, shape, jnp.float32, -scale, scale)
    return {
        # stored pre-transposed for right-multiplication
        "wih_T": u(ks[0], (input_dim, 4 * hidden_dim)),    # (D, 4H)
        "whh_T": u(ks[1], (hidden_dim, 4 * hidden_dim)),   # (H, 4H)
        "bih": u(ks[2], (1, 4 * hidden_dim)),
        "bhh": u(ks[3], (1, 4 * hidden_dim)),
        "wout_T": u(ks[4], (hidden_dim, input_dim)),       # (H, D)
        "bout": u(ks[5], (1, input_dim)),
    }


if __name__ == "__main__":
    B, T, D, H = 8, 8, 16, 32

    key = jax.random.PRNGKey(0)
    k_x, k_p = jax.random.split(key)
    x = jax.random.normal(k_x, (B, T, D), jnp.float32)
    lengths = jnp.array([8, 5, 3, 8, 1, 6, 7, 2], jnp.int32)
    params = init_params(k_p, D, H)

    fwd = jax.jit(lstm_pretrain_forward)
    out = jax.block_until_ready(fwd(x, lengths, params))

    ref = lstm_pretrain_reference(x, lengths, params)
    assert out.shape == (B, T, D)
    assert jnp.allclose(out, ref, rtol=1e-4, atol=1e-4), \
        float(jnp.max(jnp.abs(out - ref)))

    print("KERNEL_OK")
</pallas_src>

<mosaic_0001>
module attributes {stable_mosaic.version = 11 : i64} {
  func.func @_lstm_chunk_kernel(%arg0: i32, %arg1: i32, %arg2: memref<8x8x128xf32, #tpu.memory_space<vmem>>, %arg3: memref<32x128xf32, #tpu.memory_space<any>>, %arg4: memref<8x8x32xf32, #tpu.memory_space<vmem>>, %arg5: memref<32x128xf32, #tpu.memory_space<vmem>>, %arg6: memref<8x32xf32, #tpu.memory_space<vmem>>, %arg7: memref<8x32xf32, #tpu.memory_space<vmem>>, %arg8: memref<!tpu.dma_semaphore, #tpu.memory_space<semaphore_mem>>) attributes {dimension_semantics = [#tpu.dimension_semantics<parallel>, #tpu.dimension_semantics<arbitrary>], iteration_bounds = array<i64: 1, 1>, scalar_prefetch = 0 : i64, scratch_operands = 4 : i64, tpu.core_type = #tpu.core_type<tc>, window_params = [{transform_indices = @transform_0, window_bounds = array<i64: 8, 8, 128>}, {}, {transform_indices = @transform_2, window_bounds = array<i64: 8, 8, 32>}]} {
    %c0_i32 = arith.constant 0 : i32
    %0 = arith.cmpi eq, %arg1, %c0_i32 : i32
    %1 = arith.extui %0 : i1 to i32
    %c0_i32_0 = arith.constant 0 : i32
    %2 = arith.cmpi ne, %1, %c0_i32_0 : i32
    scf.if %2 {
      %cst_88 = arith.constant 0.000000e+00 : f32
      %287 = vector.broadcast %cst_88 : f32 to vector<8x32xf32>
      %c0_89 = arith.constant 0 : index
      %c0_90 = arith.constant 0 : index
      %288 = vector.load %arg6[%c0_89, %c0_90] : memref<8x32xf32, #tpu.memory_space<vmem>>, vector<8x32xf32>
      tpu.vector_store %arg6[%c0_89, %c0_90], %287 {strides = array<i32>} : memref<8x32xf32, #tpu.memory_space<vmem>>, vector<8x32xf32>,
      %cst_91 = arith.constant 0.000000e+00 : f32
      %289 = vector.broadcast %cst_91 : f32 to vector<8x32xf32>
      %c0_92 = arith.constant 0 : index
      %c0_93 = arith.constant 0 : index
      %290 = vector.load %arg7[%c0_92, %c0_93] : memref<8x32xf32, #tpu.memory_space<vmem>>, vector<8x32xf32>
      tpu.vector_store %arg7[%c0_92, %c0_93], %289 {strides = array<i32>} : memref<8x32xf32, #tpu.memory_space<vmem>>, vector<8x32xf32>,
      tpu.enqueue_dma source(%arg3 : memref<32x128xf32, #tpu.memory_space<any>>) target(%arg5 : memref<32x128xf32, #tpu.memory_space<vmem>>) target_semaphore(%arg8 : memref<!tpu.dma_semaphore, #tpu.memory_space<semaphore_mem>>)
      tpu.wait_dma2 semaphore(%arg8 : memref<!tpu.dma_semaphore, #tpu.memory_space<semaphore_mem>>) src(%arg3 : memref<32x128xf32, #tpu.memory_space<any>>) dst(%arg5 : memref<32x128xf32, #tpu.memory_space<vmem>>)
    } else {
    }
    %c0 = arith.constant 0 : index
    %c0_1 = arith.constant 0 : index
    %3 = vector.load %arg6[%c0, %c0_1] : memref<8x32xf32, #tpu.memory_space<vmem>>, vector<8x32xf32>
    %c0_2 = arith.constant 0 : index
    %c0_3 = arith.constant 0 : index
    %4 = vector.load %arg7[%c0_2, %c0_3] : memref<8x32xf32, #tpu.memory_space<vmem>>, vector<8x32xf32>
    %c0_i32_4 = arith.constant 0 : i32
    %5 = arith.index_cast %c0_i32_4 : i32 to index
    %c0_5 = arith.constant 0 : index
    %c0_6 = arith.constant 0 : index
    %6 = vector.load %arg2[%5, %c0_5, %c0_6] : memref<8x8x128xf32, #tpu.memory_space<vmem>>, vector<1x8x128xf32>
    %7 = vector.shape_cast %6 : vector<1x8x128xf32> to vector<8x128xf32>
    %c0_7 = arith.constant 0 : index
    %c0_8 = arith.constant 0 : index
    %8 = vector.load %arg5[%c0_7, %c0_8] : memref<32x128xf32, #tpu.memory_space<vmem>>, vector<32x128xf32>
    %cst = arith.constant dense<0.000000e+00> : vector<8x128xf32>
    %9 = tpu.matmul %3, %8, %cst {dimension_numbers = #tpu.dot_dimension_numbers<[1], [0], [0], [1], [0, 0, 1, 1], [], []>} : vector<8x32xf32>, vector<32x128xf32>, vector<8x128xf32> -> vector<8x128xf32>
    %10 = arith.addf %7, %9 : vector<8x128xf32>
    %11 = vector.extract_strided_slice %10 {offsets = [0, 0], sizes = [8, 32], strides = [1, 1]} : vector<8x128xf32> to vector<8x32xf32>
    %12 = arith.negf %11 : vector<8x32xf32>
    %13 = math.exp %12 : vector<8x32xf32>
    %cst_9 = arith.constant 1.000000e+00 : f32
    %14 = vector.broadcast %cst_9 : f32 to vector<8x32xf32>
    %15 = arith.addf %14, %13 : vector<8x32xf32>
    %16 = arith.divf %14, %15 : vector<8x32xf32>
    %17 = vector.extract_strided_slice %10 {offsets = [0, 32], sizes = [8, 32], strides = [1, 1]} : vector<8x128xf32> to vector<8x32xf32>
    %18 = arith.negf %17 : vector<8x32xf32>
    %19 = math.exp %18 : vector<8x32xf32>
    %cst_10 = arith.constant 1.000000e+00 : f32
    %20 = vector.broadcast %cst_10 : f32 to vector<8x32xf32>
    %21 = arith.addf %20, %19 : vector<8x32xf32>
    %22 = arith.divf %20, %21 : vector<8x32xf32>
    %23 = vector.extract_strided_slice %10 {offsets = [0, 64], sizes = [8, 32], strides = [1, 1]} : vector<8x128xf32> to vector<8x32xf32>
    %24 = math.tanh %23 : vector<8x32xf32>
    %25 = vector.extract_strided_slice %10 {offsets = [0, 96], sizes = [8, 32], strides = [1, 1]} : vector<8x128xf32> to vector<8x32xf32>
    %26 = arith.negf %25 : vector<8x32xf32>
    %27 = math.exp %26 : vector<8x32xf32>
    %cst_11 = arith.constant 1.000000e+00 : f32
    %28 = vector.broadcast %cst_11 : f32 to vector<8x32xf32>
    %29 = arith.addf %28, %27 : vector<8x32xf32>
    %30 = arith.divf %28, %29 : vector<8x32xf32>
    %31 = arith.mulf %22, %4 : vector<8x32xf32>
    %32 = arith.mulf %16, %24 : vector<8x32xf32>
    %33 = arith.addf %31, %32 : vector<8x32xf32>
    %34 = math.tanh %33 : vector<8x32xf32>
    %35 = arith.mulf %30, %34 : vector<8x32xf32>
    %36 = arith.index_cast %c0_i32_4 : i32 to index
    %c0_12 = arith.constant 0 : index
    %c0_13 = arith.constant 0 : index
    %37 = vector.load %arg4[%36, %c0_12, %c0_13] : memref<8x8x32xf32, #tpu.memory_space<vmem>>, vector<1x8x32xf32>
    %38 = vector.shape_cast %37 : vector<1x8x32xf32> to vector<8x32xf32>
    %39 = vector.shape_cast %35 : vector<8x32xf32> to vector<1x8x32xf32>
    tpu.vector_store %arg4[%36, %c0_12, %c0_13], %39 {strides = array<i32>} : memref<8x8x32xf32, #tpu.memory_space<vmem>>, vector<1x8x32xf32>,
    %c1_i32 = arith.constant 1 : i32
    %40 = arith.index_cast %c1_i32 : i32 to index
    %c0_14 = arith.constant 0 : index
    %c0_15 = arith.constant 0 : index
    %41 = vector.load %arg2[%40, %c0_14, %c0_15] : memref<8x8x128xf32, #tpu.memory_space<vmem>>, vector<1x8x128xf32>
    %42 = vector.shape_cast %41 : vector<1x8x128xf32> to vector<8x128xf32>
    %c0_16 = arith.constant 0 : index
    %c0_17 = arith.constant 0 : index
    %43 = vector.load %arg5[%c0_16, %c0_17] : memref<32x128xf32, #tpu.memory_space<vmem>>, vector<32x128xf32>
    %cst_18 = arith.constant dense<0.000000e+00> : vector<8x128xf32>
    %44 = tpu.matmul %35, %43, %cst_18 {dimension_numbers = #tpu.dot_dimension_numbers<[1], [0], [0], [1], [0, 0, 1, 1], [], []>} : vector<8x32xf32>, vector<32x128xf32>, vector<8x128xf32> -> vector<8x128xf32>
    %45 = arith.addf %42, %44 : vector<8x128xf32>
    %46 = vector.extract_strided_slice %45 {offsets = [0, 0], sizes = [8, 32], strides = [1, 1]} : vector<8x128xf32> to vector<8x32xf32>
    %47 = arith.negf %46 : vector<8x32xf32>
    %48 = math.exp %47 : vector<8x32xf32>
    %cst_19 = arith.constant 1.000000e+00 : f32
    %49 = vector.broadcast %cst_19 : f32 to vector<8x32xf32>
    %50 = arith.addf %49, %48 : vector<8x32xf32>
    %51 = arith.divf %49, %50 : vector<8x32xf32>
    %52 = vector.extract_strided_slice %45 {offsets = [0, 32], sizes = [8, 32], strides = [1, 1]} : vector<8x128xf32> to vector<8x32xf32>
    %53 = arith.negf %52 : vector<8x32xf32>
    %54 = math.exp %53 : vector<8x32xf32>
    %cst_20 = arith.constant 1.000000e+00 : f32
    %55 = vector.broadcast %cst_20 : f32 to vector<8x32xf32>
    %56 = arith.addf %55, %54 : vector<8x32xf32>
    %57 = arith.divf %55, %56 : vector<8x32xf32>
    %58 = vector.extract_strided_slice %45 {offsets = [0, 64], sizes = [8, 32], strides = [1, 1]} : vector<8x128xf32> to vector<8x32xf32>
    %59 = math.tanh %58 : vector<8x32xf32>
    %60 = vector.extract_strided_slice %45 {offsets = [0, 96], sizes = [8, 32], strides = [1, 1]} : vector<8x128xf32> to vector<8x32xf32>
    %61 = arith.negf %60 : vector<8x32xf32>
    %62 = math.exp %61 : vector<8x32xf32>
    %cst_21 = arith.constant 1.000000e+00 : f32
    %63 = vector.broadcast %cst_21 : f32 to vector<8x32xf32>
    %64 = arith.addf %63, %62 : vector<8x32xf32>
    %65 = arith.divf %63, %64 : vector<8x32xf32>
    %66 = arith.mulf %57, %33 : vector<8x32xf32>
    %67 = arith.mulf %51, %59 : vector<8x32xf32>
    %68 = arith.addf %66, %67 : vector<8x32xf32>
    %69 = math.tanh %68 : vector<8x32xf32>
    %70 = arith.mulf %65, %69 : vector<8x32xf32>
    %71 = arith.index_cast %c1_i32 : i32 to index
    %c0_22 = arith.constant 0 : index
    %c0_23 = arith.constant 0 : index
    %72 = vector.load %arg4[%71, %c0_22, %c0_23] : memref<8x8x32xf32, #tpu.memory_space<vmem>>, vector<1x8x32xf32>
    %73 = vector.shape_cast %72 : vector<1x8x32xf32> to vector<8x32xf32>
    %74 = vector.shape_cast %70 : vector<8x32xf32> to vector<1x8x32xf32>
    tpu.vector_store %arg4[%71, %c0_22, %c0_23], %74 {strides = array<i32>} : memref<8x8x32xf32, #tpu.memory_space<vmem>>, vector<1x8x32xf32>,
    %c2_i32 = arith.constant 2 : i32
    %75 = arith.index_cast %c2_i32 : i32 to index
    %c0_24 = arith.constant 0 : index
    %c0_25 = arith.constant 0 : index
    %76 = vector.load %arg2[%75, %c0_24, %c0_25] : memref<8x8x128xf32, #tpu.memory_space<vmem>>, vector<1x8x128xf32>
    %77 = vector.shape_cast %76 : vector<1x8x128xf32> to vector<8x128xf32>
    %c0_26 = arith.constant 0 : index
    %c0_27 = arith.constant 0 : index
    %78 = vector.load %arg5[%c0_26, %c0_27] : memref<32x128xf32, #tpu.memory_space<vmem>>, vector<32x128xf32>
    %cst_28 = arith.constant dense<0.000000e+00> : vector<8x128xf32>
    %79 = tpu.matmul %70, %78, %cst_28 {dimension_numbers = #tpu.dot_dimension_numbers<[1], [0], [0], [1], [0, 0, 1, 1], [], []>} : vector<8x32xf32>, vector<32x128xf32>, vector<8x128xf32> -> vector<8x128xf32>
    %80 = arith.addf %77, %79 : vector<8x128xf32>
    %81 = vector.extract_strided_slice %80 {offsets = [0, 0], sizes = [8, 32], strides = [1, 1]} : vector<8x128xf32> to vector<8x32xf32>
    %82 = arith.negf %81 : vector<8x32xf32>
    %83 = math.exp %82 : vector<8x32xf32>
    %cst_29 = arith.constant 1.000000e+00 : f32
    %84 = vector.broadcast %cst_29 : f32 to vector<8x32xf32>
    %85 = arith.addf %84, %83 : vector<8x32xf32>
    %86 = arith.divf %84, %85 : vector<8x32xf32>
    %87 = vector.extract_strided_slice %80 {offsets = [0, 32], sizes = [8, 32], strides = [1, 1]} : vector<8x128xf32> to vector<8x32xf32>
    %88 = arith.negf %87 : vector<8x32xf32>
    %89 = math.exp %88 : vector<8x32xf32>
    %cst_30 = arith.constant 1.000000e+00 : f32
    %90 = vector.broadcast %cst_30 : f32 to vector<8x32xf32>
    %91 = arith.addf %90, %89 : vector<8x32xf32>
    %92 = arith.divf %90, %91 : vector<8x32xf32>
    %93 = vector.extract_strided_slice %80 {offsets = [0, 64], sizes = [8, 32], strides = [1, 1]} : vector<8x128xf32> to vector<8x32xf32>
    %94 = math.tanh %93 : vector<8x32xf32>
    %95 = vector.extract_strided_slice %80 {offsets = [0, 96], sizes = [8, 32], strides = [1, 1]} : vector<8x128xf32> to vector<8x32xf32>
    %96 = arith.negf %95 : vector<8x32xf32>
    %97 = math.exp %96 : vector<8x32xf32>
    %cst_31 = arith.constant 1.000000e+00 : f32
    %98 = vector.broadcast %cst_31 : f32 to vector<8x32xf32>
    %99 = arith.addf %98, %97 : vector<8x32xf32>
    %100 = arith.divf %98, %99 : vector<8x32xf32>
    %101 = arith.mulf %92, %68 : vector<8x32xf32>
    %102 = arith.mulf %86, %94 : vector<8x32xf32>
    %103 = arith.addf %101, %102 : vector<8x32xf32>
    %104 = math.tanh %103 : vector<8x32xf32>
    %105 = arith.mulf %100, %104 : vector<8x32xf32>
    %106 = arith.index_cast %c2_i32 : i32 to index
    %c0_32 = arith.constant 0 : index
    %c0_33 = arith.constant 0 : index
    %107 = vector.load %arg4[%106, %c0_32, %c0_33] : memref<8x8x32xf32, #tpu.memory_space<vmem>>, vector<1x8x32xf32>
    %108 = vector.shape_cast %107 : vector<1x8x32xf32> to vector<8x32xf32>
    %109 = vector.shape_cast %105 : vector<8x32xf32> to vector<1x8x32xf32>
    tpu.vector_store %arg4[%106, %c0_32, %c0_33], %109 {strides = array<i32>} : memref<8x8x32xf32, #tpu.memory_space<vmem>>, vector<1x8x32xf32>,
    %c3_i32 = arith.constant 3 : i32
    %110 = arith.index_cast %c3_i32 : i32 to index
    %c0_34 = arith.constant 0 : index
    %c0_35 = arith.constant 0 : index
    %111 = vector.load %arg2[%110, %c0_34, %c0_35] : memref<8x8x128xf32, #tpu.memory_space<vmem>>, vector<1x8x128xf32>
    %112 = vector.shape_cast %111 : vector<1x8x128xf32> to vector<8x128xf32>
    %c0_36 = arith.constant 0 : index
    %c0_37 = arith.constant 0 : index
    %113 = vector.load %arg5[%c0_36, %c0_37] : memref<32x128xf32, #tpu.memory_space<vmem>>, vector<32x128xf32>
    %cst_38 = arith.constant dense<0.000000e+00> : vector<8x128xf32>
    %114 = tpu.matmul %105, %113, %cst_38 {dimension_numbers = #tpu.dot_dimension_numbers<[1], [0], [0], [1], [0, 0, 1, 1], [], []>} : vector<8x32xf32>, vector<32x128xf32>, vector<8x128xf32> -> vector<8x128xf32>
    %115 = arith.addf %112, %114 : vector<8x128xf32>
    %116 = vector.extract_strided_slice %115 {offsets = [0, 0], sizes = [8, 32], strides = [1, 1]} : vector<8x128xf32> to vector<8x32xf32>
    %117 = arith.negf %116 : vector<8x32xf32>
    %118 = math.exp %117 : vector<8x32xf32>
    %cst_39 = arith.constant 1.000000e+00 : f32
    %119 = vector.broadcast %cst_39 : f32 to vector<8x32xf32>
    %120 = arith.addf %119, %118 : vector<8x32xf32>
    %121 = arith.divf %119, %120 : vector<8x32xf32>
    %122 = vector.extract_strided_slice %115 {offsets = [0, 32], sizes = [8, 32], strides = [1, 1]} : vector<8x128xf32> to vector<8x32xf32>
    %123 = arith.negf %122 : vector<8x32xf32>
    %124 = math.exp %123 : vector<8x32xf32>
    %cst_40 = arith.constant 1.000000e+00 : f32
    %125 = vector.broadcast %cst_40 : f32 to vector<8x32xf32>
    %126 = arith.addf %125, %124 : vector<8x32xf32>
    %127 = arith.divf %125, %126 : vector<8x32xf32>
    %128 = vector.extract_strided_slice %115 {offsets = [0, 64], sizes = [8, 32], strides = [1, 1]} : vector<8x128xf32> to vector<8x32xf32>
    %129 = math.tanh %128 : vector<8x32xf32>
    %130 = vector.extract_strided_slice %115 {offsets = [0, 96], sizes = [8, 32], strides = [1, 1]} : vector<8x128xf32> to vector<8x32xf32>
    %131 = arith.negf %130 : vector<8x32xf32>
    %132 = math.exp %131 : vector<8x32xf32>
    %cst_41 = arith.constant 1.000000e+00 : f32
    %133 = vector.broadcast %cst_41 : f32 to vector<8x32xf32>
    %134 = arith.addf %133, %132 : vector<8x32xf32>
    %135 = arith.divf %133, %134 : vector<8x32xf32>
    %136 = arith.mulf %127, %103 : vector<8x32xf32>
    %137 = arith.mulf %121, %129 : vector<8x32xf32>
    %138 = arith.addf %136, %137 : vector<8x32xf32>
    %139 = math.tanh %138 : vector<8x32xf32>
    %140 = arith.mulf %135, %139 : vector<8x32xf32>
    %141 = arith.index_cast %c3_i32 : i32 to index
    %c0_42 = arith.constant 0 : index
    %c0_43 = arith.constant 0 : index
    %142 = vector.load %arg4[%141, %c0_42, %c0_43] : memref<8x8x32xf32, #tpu.memory_space<vmem>>, vector<1x8x32xf32>
    %143 = vector.shape_cast %142 : vector<1x8x32xf32> to vector<8x32xf32>
    %144 = vector.shape_cast %140 : vector<8x32xf32> to vector<1x8x32xf32>
    tpu.vector_store %arg4[%141, %c0_42, %c0_43], %144 {strides = array<i32>} : memref<8x8x32xf32, #tpu.memory_space<vmem>>, vector<1x8x32xf32>,
    %c4_i32 = arith.constant 4 : i32
    %145 = arith.index_cast %c4_i32 : i32 to index
    %c0_44 = arith.constant 0 : index
    %c0_45 = arith.constant 0 : index
    %146 = vector.load %arg2[%145, %c0_44, %c0_45] : memref<8x8x128xf32, #tpu.memory_space<vmem>>, vector<1x8x128xf32>
    %147 = vector.shape_cast %146 : vector<1x8x128xf32> to vector<8x128xf32>
    %c0_46 = arith.constant 0 : index
    %c0_47 = arith.constant 0 : index
    %148 = vector.load %arg5[%c0_46, %c0_47] : memref<32x128xf32, #tpu.memory_space<vmem>>, vector<32x128xf32>
    %cst_48 = arith.constant dense<0.000000e+00> : vector<8x128xf32>
    %149 = tpu.matmul %140, %148, %cst_48 {dimension_numbers = #tpu.dot_dimension_numbers<[1], [0], [0], [1], [0, 0, 1, 1], [], []>} : vector<8x32xf32>, vector<32x128xf32>, vector<8x128xf32> -> vector<8x128xf32>
    %150 = arith.addf %147, %149 : vector<8x128xf32>
    %151 = vector.extract_strided_slice %150 {offsets = [0, 0], sizes = [8, 32], strides = [1, 1]} : vector<8x128xf32> to vector<8x32xf32>
    %152 = arith.negf %151 : vector<8x32xf32>
    %153 = math.exp %152 : vector<8x32xf32>
    %cst_49 = arith.constant 1.000000e+00 : f32
    %154 = vector.broadcast %cst_49 : f32 to vector<8x32xf32>
    %155 = arith.addf %154, %153 : vector<8x32xf32>
    %156 = arith.divf %154, %155 : vector<8x32xf32>
    %157 = vector.extract_strided_slice %150 {offsets = [0, 32], sizes = [8, 32], strides = [1, 1]} : vector<8x128xf32> to vector<8x32xf32>
    %158 = arith.negf %157 : vector<8x32xf32>
    %159 = math.exp %158 : vector<8x32xf32>
    %cst_50 = arith.constant 1.000000e+00 : f32
    %160 = vector.broadcast %cst_50 : f32 to vector<8x32xf32>
    %161 = arith.addf %160, %159 : vector<8x32xf32>
    %162 = arith.divf %160, %161 : vector<8x32xf32>
    %163 = vector.extract_strided_slice %150 {offsets = [0, 64], sizes = [8, 32], strides = [1, 1]} : vector<8x128xf32> to vector<8x32xf32>
    %164 = math.tanh %163 : vector<8x32xf32>
    %165 = vector.extract_strided_slice %150 {offsets = [0, 96], sizes = [8, 32], strides = [1, 1]} : vector<8x128xf32> to vector<8x32xf32>
    %166 = arith.negf %165 : vector<8x32xf32>
    %167 = math.exp %166 : vector<8x32xf32>
    %cst_51 = arith.constant 1.000000e+00 : f32
    %168 = vector.broadcast %cst_51 : f32 to vector<8x32xf32>
    %169 = arith.addf %168, %167 : vector<8x32xf32>
    %170 = arith.divf %168, %169 : vector<8x32xf32>
    %171 = arith.mulf %162, %138 : vector<8x32xf32>
    %172 = arith.mulf %156, %164 : vector<8x32xf32>
    %173 = arith.addf %171, %172 : vector<8x32xf32>
    %174 = math.tanh %173 : vector<8x32xf32>
    %175 = arith.mulf %170, %174 : vector<8x32xf32>
    %176 = arith.index_cast %c4_i32 : i32 to index
    %c0_52 = arith.constant 0 : index
    %c0_53 = arith.constant 0 : index
    %177 = vector.load %arg4[%176, %c0_52, %c0_53] : memref<8x8x32xf32, #tpu.memory_space<vmem>>, vector<1x8x32xf32>
    %178 = vector.shape_cast %177 : vector<1x8x32xf32> to vector<8x32xf32>
    %179 = vector.shape_cast %175 : vector<8x32xf32> to vector<1x8x32xf32>
    tpu.vector_store %arg4[%176, %c0_52, %c0_53], %179 {strides = array<i32>} : memref<8x8x32xf32, #tpu.memory_space<vmem>>, vector<1x8x32xf32>,
    %c5_i32 = arith.constant 5 : i32
    %180 = arith.index_cast %c5_i32 : i32 to index
    %c0_54 = arith.constant 0 : index
    %c0_55 = arith.constant 0 : index
    %181 = vector.load %arg2[%180, %c0_54, %c0_55] : memref<8x8x128xf32, #tpu.memory_space<vmem>>, vector<1x8x128xf32>
    %182 = vector.shape_cast %181 : vector<1x8x128xf32> to vector<8x128xf32>
    %c0_56 = arith.constant 0 : index
    %c0_57 = arith.constant 0 : index
    %183 = vector.load %arg5[%c0_56, %c0_57] : memref<32x128xf32, #tpu.memory_space<vmem>>, vector<32x128xf32>
    %cst_58 = arith.constant dense<0.000000e+00> : vector<8x128xf32>
    %184 = tpu.matmul %175, %183, %cst_58 {dimension_numbers = #tpu.dot_dimension_numbers<[1], [0], [0], [1], [0, 0, 1, 1], [], []>} : vector<8x32xf32>, vector<32x128xf32>, vector<8x128xf32> -> vector<8x128xf32>
    %185 = arith.addf %182, %184 : vector<8x128xf32>
    %186 = vector.extract_strided_slice %185 {offsets = [0, 0], sizes = [8, 32], strides = [1, 1]} : vector<8x128xf32> to vector<8x32xf32>
    %187 = arith.negf %186 : vector<8x32xf32>
    %188 = math.exp %187 : vector<8x32xf32>
    %cst_59 = arith.constant 1.000000e+00 : f32
    %189 = vector.broadcast %cst_59 : f32 to vector<8x32xf32>
    %190 = arith.addf %189, %188 : vector<8x32xf32>
    %191 = arith.divf %189, %190 : vector<8x32xf32>
    %192 = vector.extract_strided_slice %185 {offsets = [0, 32], sizes = [8, 32], strides = [1, 1]} : vector<8x128xf32> to vector<8x32xf32>
    %193 = arith.negf %192 : vector<8x32xf32>
    %194 = math.exp %193 : vector<8x32xf32>
    %cst_60 = arith.constant 1.000000e+00 : f32
    %195 = vector.broadcast %cst_60 : f32 to vector<8x32xf32>
    %196 = arith.addf %195, %194 : vector<8x32xf32>
    %197 = arith.divf %195, %196 : vector<8x32xf32>
    %198 = vector.extract_strided_slice %185 {offsets = [0, 64], sizes = [8, 32], strides = [1, 1]} : vector<8x128xf32> to vector<8x32xf32>
    %199 = math.tanh %198 : vector<8x32xf32>
    %200 = vector.extract_strided_slice %185 {offsets = [0, 96], sizes = [8, 32], strides = [1, 1]} : vector<8x128xf32> to vector<8x32xf32>
    %201 = arith.negf %200 : vector<8x32xf32>
    %202 = math.exp %201 : vector<8x32xf32>
    %cst_61 = arith.constant 1.000000e+00 : f32
    %203 = vector.broadcast %cst_61 : f32 to vector<8x32xf32>
    %204 = arith.addf %203, %202 : vector<8x32xf32>
    %205 = arith.divf %203, %204 : vector<8x32xf32>
    %206 = arith.mulf %197, %173 : vector<8x32xf32>
    %207 = arith.mulf %191, %199 : vector<8x32xf32>
    %208 = arith.addf %206, %207 : vector<8x32xf32>
    %209 = math.tanh %208 : vector<8x32xf32>
    %210 = arith.mulf %205, %209 : vector<8x32xf32>
    %211 = arith.index_cast %c5_i32 : i32 to index
    %c0_62 = arith.constant 0 : index
    %c0_63 = arith.constant 0 : index
    %212 = vector.load %arg4[%211, %c0_62, %c0_63] : memref<8x8x32xf32, #tpu.memory_space<vmem>>, vector<1x8x32xf32>
    %213 = vector.shape_cast %212 : vector<1x8x32xf32> to vector<8x32xf32>
    %214 = vector.shape_cast %210 : vector<8x32xf32> to vector<1x8x32xf32>
    tpu.vector_store %arg4[%211, %c0_62, %c0_63], %214 {strides = array<i32>} : memref<8x8x32xf32, #tpu.memory_space<vmem>>, vector<1x8x32xf32>,
    %c6_i32 = arith.constant 6 : i32
    %215 = arith.index_cast %c6_i32 : i32 to index
    %c0_64 = arith.constant 0 : index
    %c0_65 = arith.constant 0 : index
    %216 = vector.load %arg2[%215, %c0_64, %c0_65] : memref<8x8x128xf32, #tpu.memory_space<vmem>>, vector<1x8x128xf32>
    %217 = vector.shape_cast %216 : vector<1x8x128xf32> to vector<8x128xf32>
    %c0_66 = arith.constant 0 : index
    %c0_67 = arith.constant 0 : index
    %218 = vector.load %arg5[%c0_66, %c0_67] : memref<32x128xf32, #tpu.memory_space<vmem>>, vector<32x128xf32>
    %cst_68 = arith.constant dense<0.000000e+00> : vector<8x128xf32>
    %219 = tpu.matmul %210, %218, %cst_68 {dimension_numbers = #tpu.dot_dimension_numbers<[1], [0], [0], [1], [0, 0, 1, 1], [], []>} : vector<8x32xf32>, vector<32x128xf32>, vector<8x128xf32> -> vector<8x128xf32>
    %220 = arith.addf %217, %219 : vector<8x128xf32>
    %221 = vector.extract_strided_slice %220 {offsets = [0, 0], sizes = [8, 32], strides = [1, 1]} : vector<8x128xf32> to vector<8x32xf32>
    %222 = arith.negf %221 : vector<8x32xf32>
    %223 = math.exp %222 : vector<8x32xf32>
    %cst_69 = arith.constant 1.000000e+00 : f32
    %224 = vector.broadcast %cst_69 : f32 to vector<8x32xf32>
    %225 = arith.addf %224, %223 : vector<8x32xf32>
    %226 = arith.divf %224, %225 : vector<8x32xf32>
    %227 = vector.extract_strided_slice %220 {offsets = [0, 32], sizes = [8, 32], strides = [1, 1]} : vector<8x128xf32> to vector<8x32xf32>
    %228 = arith.negf %227 : vector<8x32xf32>
    %229 = math.exp %228 : vector<8x32xf32>
    %cst_70 = arith.constant 1.000000e+00 : f32
    %230 = vector.broadcast %cst_70 : f32 to vector<8x32xf32>
    %231 = arith.addf %230, %229 : vector<8x32xf32>
    %232 = arith.divf %230, %231 : vector<8x32xf32>
    %233 = vector.extract_strided_slice %220 {offsets = [0, 64], sizes = [8, 32], strides = [1, 1]} : vector<8x128xf32> to vector<8x32xf32>
    %234 = math.tanh %233 : vector<8x32xf32>
    %235 = vector.extract_strided_slice %220 {offsets = [0, 96], sizes = [8, 32], strides = [1, 1]} : vector<8x128xf32> to vector<8x32xf32>
    %236 = arith.negf %235 : vector<8x32xf32>
    %237 = math.exp %236 : vector<8x32xf32>
    %cst_71 = arith.constant 1.000000e+00 : f32
    %238 = vector.broadcast %cst_71 : f32 to vector<8x32xf32>
    %239 = arith.addf %238, %237 : vector<8x32xf32>
    %240 = arith.divf %238, %239 : vector<8x32xf32>
    %241 = arith.mulf %232, %208 : vector<8x32xf32>
    %242 = arith.mulf %226, %234 : vector<8x32xf32>
    %243 = arith.addf %241, %242 : vector<8x32xf32>
    %244 = math.tanh %243 : vector<8x32xf32>
    %245 = arith.mulf %240, %244 : vector<8x32xf32>
    %246 = arith.index_cast %c6_i32 : i32 to index
    %c0_72 = arith.constant 0 : index
    %c0_73 = arith.constant 0 : index
    %247 = vector.load %arg4[%246, %c0_72, %c0_73] : memref<8x8x32xf32, #tpu.memory_space<vmem>>, vector<1x8x32xf32>
    %248 = vector.shape_cast %247 : vector<1x8x32xf32> to vector<8x32xf32>
    %249 = vector.shape_cast %245 : vector<8x32xf32> to vector<1x8x32xf32>
    tpu.vector_store %arg4[%246, %c0_72, %c0_73], %249 {strides = array<i32>} : memref<8x8x32xf32, #tpu.memory_space<vmem>>, vector<1x8x32xf32>,
    %c7_i32 = arith.constant 7 : i32
    %250 = arith.index_cast %c7_i32 : i32 to index
    %c0_74 = arith.constant 0 : index
    %c0_75 = arith.constant 0 : index
    %251 = vector.load %arg2[%250, %c0_74, %c0_75] : memref<8x8x128xf32, #tpu.memory_space<vmem>>, vector<1x8x128xf32>
    %252 = vector.shape_cast %251 : vector<1x8x128xf32> to vector<8x128xf32>
    %c0_76 = arith.constant 0 : index
    %c0_77 = arith.constant 0 : index
    %253 = vector.load %arg5[%c0_76, %c0_77] : memref<32x128xf32, #tpu.memory_space<vmem>>, vector<32x128xf32>
    %cst_78 = arith.constant dense<0.000000e+00> : vector<8x128xf32>
    %254 = tpu.matmul %245, %253, %cst_78 {dimension_numbers = #tpu.dot_dimension_numbers<[1], [0], [0], [1], [0, 0, 1, 1], [], []>} : vector<8x32xf32>, vector<32x128xf32>, vector<8x128xf32> -> vector<8x128xf32>
    %255 = arith.addf %252, %254 : vector<8x128xf32>
    %256 = vector.extract_strided_slice %255 {offsets = [0, 0], sizes = [8, 32], strides = [1, 1]} : vector<8x128xf32> to vector<8x32xf32>
    %257 = arith.negf %256 : vector<8x32xf32>
    %258 = math.exp %257 : vector<8x32xf32>
    %cst_79 = arith.constant 1.000000e+00 : f32
    %259 = vector.broadcast %cst_79 : f32 to vector<8x32xf32>
    %260 = arith.addf %259, %258 : vector<8x32xf32>
    %261 = arith.divf %259, %260 : vector<8x32xf32>
    %262 = vector.extract_strided_slice %255 {offsets = [0, 32], sizes = [8, 32], strides = [1, 1]} : vector<8x128xf32> to vector<8x32xf32>
    %263 = arith.negf %262 : vector<8x32xf32>
    %264 = math.exp %263 : vector<8x32xf32>
    %cst_80 = arith.constant 1.000000e+00 : f32
    %265 = vector.broadcast %cst_80 : f32 to vector<8x32xf32>
    %266 = arith.addf %265, %264 : vector<8x32xf32>
    %267 = arith.divf %265, %266 : vector<8x32xf32>
    %268 = vector.extract_strided_slice %255 {offsets = [0, 64], sizes = [8, 32], strides = [1, 1]} : vector<8x128xf32> to vector<8x32xf32>
    %269 = math.tanh %268 : vector<8x32xf32>
    %270 = vector.extract_strided_slice %255 {offsets = [0, 96], sizes = [8, 32], strides = [1, 1]} : vector<8x128xf32> to vector<8x32xf32>
    %271 = arith.negf %270 : vector<8x32xf32>
    %272 = math.exp %271 : vector<8x32xf32>
    %cst_81 = arith.constant 1.000000e+00 : f32
    %273 = vector.broadcast %cst_81 : f32 to vector<8x32xf32>
    %274 = arith.addf %273, %272 : vector<8x32xf32>
    %275 = arith.divf %273, %274 : vector<8x32xf32>
    %276 = arith.mulf %267, %243 : vector<8x32xf32>
    %277 = arith.mulf %261, %269 : vector<8x32xf32>
    %278 = arith.addf %276, %277 : vector<8x32xf32>
    %279 = math.tanh %278 : vector<8x32xf32>
    %280 = arith.mulf %275, %279 : vector<8x32xf32>
    %281 = arith.index_cast %c7_i32 : i32 to index
    %c0_82 = arith.constant 0 : index
    %c0_83 = arith.constant 0 : index
    %282 = vector.load %arg4[%281, %c0_82, %c0_83] : memref<8x8x32xf32, #tpu.memory_space<vmem>>, vector<1x8x32xf32>
    %283 = vector.shape_cast %282 : vector<1x8x32xf32> to vector<8x32xf32>
    %284 = vector.shape_cast %280 : vector<8x32xf32> to vector<1x8x32xf32>
    tpu.vector_store %arg4[%281, %c0_82, %c0_83], %284 {strides = array<i32>} : memref<8x8x32xf32, #tpu.memory_space<vmem>>, vector<1x8x32xf32>,
    %c8_i32 = arith.constant 8 : i32
    %c0_84 = arith.constant 0 : index
    %c0_85 = arith.constant 0 : index
    %285 = vector.load %arg6[%c0_84, %c0_85] : memref<8x32xf32, #tpu.memory_space<vmem>>, vector<8x32xf32>
    tpu.vector_store %arg6[%c0_84, %c0_85], %280 {strides = array<i32>} : memref<8x32xf32, #tpu.memory_space<vmem>>, vector<8x32xf32>,
    %c0_86 = arith.constant 0 : index
    %c0_87 = arith.constant 0 : index
    %286 = vector.load %arg7[%c0_86, %c0_87] : memref<8x32xf32, #tpu.memory_space<vmem>>, vector<8x32xf32>
    tpu.vector_store %arg7[%c0_86, %c0_87], %278 {strides = array<i32>} : memref<8x32xf32, #tpu.memory_space<vmem>>, vector<8x32xf32>,
    return
  }
  func.func @transform_0(%arg0: i32, %arg1: i32) -> (i32, i32, i32) {
    %c0_i32 = arith.constant 0 : i32
    %c0_i32_0 = arith.constant 0 : i32
    return %arg1, %arg0, %c0_i32 : i32, i32, i32
  }
  func.func @transform_2(%arg0: i32, %arg1: i32) -> (i32, i32, i32) {
    %c0_i32 = arith.constant 0 : i32
    %c0_i32_0 = arith.constant 0 : i32
    return %arg1, %arg0, %c0_i32 : i32, i32, i32
  }
}

</mosaic_0001>

<bundles_post_ra>
// kernel: lstm_pretrain_forward.1
= control target key start
LH: loop header
LB: loop body
LE: loop exit
PB: predicated region body
PF: predicated region fallthrough
CT: control target
= control target key end

     0   :  { %vm13_vm0 = vcmask 261120   ;;  %v1200_v0 = vmov 0.0   ;;  %s1423_s0 = inlined_call_operand.vmem [shape: f32[8,8,128], index: 0, kind: input, shape index: {}]   ;;  %s1424_s1 = inlined_call_operand.vmem [shape: f32[32,128], index: 1, kind: input, shape index: {}]   ;;  %s1425_s2 = inlined_call_operand.vmem [shape: f32[8,8,32], index: 2, kind: output, shape index: {}]  }
   0x1   :  { %14 = vst.msk [vmem:[#allocation3] sm:$0xff] %vm13_vm0, %v1200_v0  ;;  %15 = vst.msk [vmem:[#allocation4] sm:$0xff] %vm13_vm0, %v1200_v0  ;;  %v1227_v1 = vld [vmem:[%s1424_s1] sm:$0xff]  ;;  %v1232_v2 = vld [vmem:[%s1424_s1 + $0x8] sm:$0xff] }
   0x2   :  { %v1237_v3 = vld [vmem:[%s1424_s1 + $0x10] sm:$0xff]  ;;  %v1242_v4 = vld [vmem:[%s1424_s1 + $0x18] sm:$0xff] }
   0x3   :  { %64 = vsyncadd [#allocation5], 512 }
   0x4   :  { %1198 = dma.done.wait [#allocation5], 512 }
   0x5   :  { %1199 = vsyncadd [#allocation5], 4294966784  ;;  %1041 = vmatprep.subr.mxu0 %v1200_v0  ;;  %1052 = vmatprep.subr.mxu1 %v1200_v0  ;;  %vm1201_vm1 = vmmov 0   ;;  %v70_v6 = vld [vmem:[%s1423_s0] sm:$0xff]  ;;  %s1202_s18 = smov 64   ;;  %s1203_s19 = smov 32  }
   0x6   :  { %1042 = vmatpush3.msra.mxu0 %v1242_v4  ;;  %1049 = vmatprep.mubr.msk.f32.mxu0 %vm1201_vm1, %v1200_v0  ;;  %v972_v26 = vld [vmem:[%s1423_s0 + $0x8] sm:$0xff]  ;;  %v976_v44 = vld [vmem:[%s1423_s0 + $0x10] sm:$0xff]  ;;  %v980_v62 = vld [vmem:[%s1423_s0 + $0x18] sm:$0xff] }
   0x7   :  { %1043 = vmatprep.subr.mxu0 %v1200_v0  ;;  %1053 = vmatpush3.msra.mxu1 %v1242_v4 }
   0x8   :  { %1044 = vmatpush3.msra.mxu0 %v1237_v3  ;;  %1054 = vmatprep.subr.mxu1 %v1200_v0  ;;  %v68_v5 = vld [vmem:[#allocation3] sm:$0xff]  ;;  %v69_v11 = vld [vmem:[#allocation4] sm:$0xff] }
   0x9   :  { %1045 = vmatprep.subr.mxu0 %v1200_v0  ;;  %1055 = vmatpush3.msra.mxu1 %v1237_v3 }
   0xa   :  { %1046 = vmatpush3.msra.mxu0 %v1232_v2  ;;  %1056 = vmatprep.subr.mxu1 %v1200_v0 }
   0xb   :  { %1047 = vmatprep.subr.mxu0 %v1200_v0  ;;  %1057 = vmatpush3.msra.mxu1 %v1232_v2 }
   0xc   :  { %1048 = vmatpush3.msra.mxu0 %v1227_v1  ;;  %1058 = vmatprep.subr.mxu1 %v1200_v0 }
   0xd   :  { %1050 = vmatmul.mubr.msk.f32.vlgmr.msra.gmra.mxu0 %vm13_vm0, %v68_v5  ;;  %1059 = vmatpush3.msra.mxu1 %v1227_v1 }
   0xe   :  { %1060 = vmatprep.mubr.msk.f32.mxu1 %vm1201_vm1, %v1200_v0  ;;  %1063 = vmatprep.subr.mxu0 %v1200_v0 }
   0xf   :  { %1064 = vmatpush3.msra.mxu0 %v1242_v4  ;;  %1071 = vmatprep.mubr.msk.f32.mxu0 %vm1201_vm1, %v1200_v0 }
  0x10   :  { %1065 = vmatprep.subr.mxu0 %v1200_v0  ;;  %1074 = vmatprep.subr.mxu1 %v1200_v0 }
  0x11   :  { %1066 = vmatpush3.msra.mxu0 %v1237_v3 }
  0x12   :  { %1067 = vmatprep.subr.mxu0 %v1200_v0 }
  0x13   :  { %1068 = vmatpush3.msra.mxu0 %v1232_v2 }
  0x14   :  { %1069 = vmatprep.subr.mxu0 %v1200_v0 }
  0x15   :  { %1070 = vmatpush3.msra.mxu0 %v1227_v1 }
  0x16   :  { %1085 = vmatprep.subr.mxu0 %v1200_v0 }
  0xcd   :  { %v145_v7 = vpop.f32.mrf.mxu0 }
  0xce   :  { %v149_v8 = vadd.f32 %v145_v7, %v70_v6 }
  0xcf   :  { %v1051_v9 = vpop.f32.mrf.mxu0 }
  0xd0   :  { %1134 = vtanh.f32 %v149_v8  ;;  %v971_v12 = vmul.f32 -1.442695, %v149_v8 }
  0xd2   :  { %1136 = vpow2.f32 %v971_v12 }
  0xdd   :  { %v1135_v10 = vpop.eup %1134 }
  0xde   :  { %163 = vrot.lane.b32.xlu0 %v1135_v10, %s1202_s18 }
  0xdf   :  { %v1137_v13 = vpop.eup %1136 }
  0xe0   :  { %v153_v14 = vadd.f32 1.0, %v1137_v13 }
  0xe2   :  { %158 = vrot.lane.b32.xlu0 %v69_v11, %s1203_s19  ;;  %1138 = vrcp.f32 %v153_v14 }
  0xef   :  { %v1139_v15 = vpop.eup %1138 }
 0x150   :  { %v164_v16 = vpop.permute.xlu0 %163 }
 0x151   :  { %v166_v17 = vmul.f32 %v1139_v15, %v164_v16 }
 0x153   :  { %168 = vrot.lane.b32.xlu1 %v166_v17, %s1203_s19 }
 0x154   :  { %v159_v18 = vpop.permute.xlu0 %158 }
 0x155   :  { %v161_v19 = vmul.f32 %v1139_v15, %v159_v18 }
 0x1c5   :  { %v169_v20 = vpop.permute.xlu1 %168 }
 0x1c6   :  { %v171_v21 = vadd.f32 %v169_v20, %v161_v19 }
 0x1c8   :  { %1140 = vtanh.f32 %v171_v21 }
 0x1d5   :  { %v1141_v22 = vpop.eup %1140 }
 0x1d6   :  { %174 = vrot.lane.b32.xlu1 %v1141_v22, %s1202_s18 }
 0x248   :  { %v175_v23 = vpop.permute.xlu1 %174 }
 0x249   :  { %v177_v24 = vmul.f32 %v1139_v15, %v175_v23 }
 0x24b   :  { %179 = vrot.lane.b32.xlu0 %v177_v24, %s1203_s19 }
 0x2bd   :  { %v180_v25 = vpop.permute.xlu0 %179 }
 0x2be   :  { %182 = vst.msk [vmem:[%s1425_s2] sm:$0xff] %vm13_vm0, %v180_v25  ;;  %1061 = vmatmul.mubr.msk.f32.vlgmr.msra.gmra.mxu1 %vm13_vm0, %v180_v25 }
 0x2bf   :  { %1075 = vmatpush3.msra.mxu1 %v1242_v4  ;;  %1082 = vmatprep.mubr.msk.f32.mxu1 %vm1201_vm1, %v1200_v0 }
 0x2c0   :  { %1076 = vmatprep.subr.mxu1 %v1200_v0 }
 0x2c1   :  { %1077 = vmatpush3.msra.mxu1 %v1237_v3 }
 0x2c2   :  { %1078 = vmatprep.subr.mxu1 %v1200_v0 }
 0x2c3   :  { %1079 = vmatpush3.msra.mxu1 %v1232_v2 }
 0x2c4   :  { %1080 = vmatprep.subr.mxu1 %v1200_v0 }
 0x2c5   :  { %1081 = vmatpush3.msra.mxu1 %v1227_v1 }
 0x2c6   :  { %1096 = vmatprep.subr.mxu1 %v1200_v0 }
 0x37e   :  { %v257_v27 = vpop.f32.mrf.mxu1 }
 0x37f   :  { %v261_v28 = vadd.f32 %v972_v26, %v257_v27 }
 0x380   :  { %v1062_v29 = vpop.f32.mrf.mxu1 }
 0x381   :  { %1142 = vtanh.f32 %v261_v28  ;;  %v974_v31 = vmul.f32 -1.442695, %v261_v28 }
 0x383   :  { %1144 = vpow2.f32 %v974_v31 }
 0x38e   :  { %v1143_v30 = vpop.eup %1142 }
 0x38f   :  { %271 = vrot.lane.b32.xlu1 %v1143_v30, %s1202_s18 }
 0x390   :  { %v1145_v32 = vpop.eup %1144 }
 0x391   :  { %v265_v33 = vadd.f32 1.0, %v1145_v32 }
 0x393   :  { %1146 = vrcp.f32 %v265_v33 }
 0x3a0   :  { %v1147_v34 = vpop.eup %1146 }
 0x3a1   :  { %v269_v37 = vmul.f32 %v1147_v34, %v171_v21  ;;  %v984_v21 = vld [vmem:[%s1423_s0 + $0x20] sm:$0xff] }
 0x401   :  { %v272_v35 = vpop.permute.xlu1 %271 }
 0x402   :  { %v274_v36 = vmul.f32 %v1147_v34, %v272_v35 }
 0x404   :  { %276 = vrot.lane.b32.xlu0 %v274_v36, %s1203_s19 }
 0x476   :  { %v277_v38 = vpop.permute.xlu0 %276 }
 0x477   :  { %v279_v39 = vadd.f32 %v277_v38, %v269_v37 }
 0x479   :  { %1148 = vtanh.f32 %v279_v39 }
 0x486   :  { %v1149_v40 = vpop.eup %1148 }
 0x487   :  { %282 = vrot.lane.b32.xlu1 %v1149_v40, %s1202_s18 }
 0x4f9   :  { %v283_v41 = vpop.permute.xlu1 %282 }
 0x4fa   :  { %v285_v42 = vmul.f32 %v1147_v34, %v283_v41 }
 0x4fc   :  { %287 = vrot.lane.b32.xlu0 %v285_v42, %s1203_s19 }
 0x56e   :  { %v288_v43 = vpop.permute.xlu0 %287 }
 0x56f   :  { %975 = vst.msk [vmem:[%s1425_s2 + $0x8] sm:$0xff] %vm13_vm0, %v288_v43  ;;  %1072 = vmatmul.mubr.msk.f32.vlgmr.msra.gmra.mxu0 %vm13_vm0, %v288_v43 }
 0x570   :  { %1086 = vmatpush3.msra.mxu0 %v1242_v4  ;;  %1093 = vmatprep.mubr.msk.f32.mxu0 %vm1201_vm1, %v1200_v0 }
 0x571   :  { %1087 = vmatprep.subr.mxu0 %v1200_v0 }
 0x572   :  { %1088 = vmatpush3.msra.mxu0 %v1237_v3 }
 0x573   :  { %1089 = vmatprep.subr.mxu0 %v1200_v0 }
 0x574   :  { %1090 = vmatpush3.msra.mxu0 %v1232_v2 }
 0x575   :  { %1091 = vmatprep.subr.mxu0 %v1200_v0 }
 0x576   :  { %1092 = vmatpush3.msra.mxu0 %v1227_v1 }
 0x577   :  { %1107 = vmatprep.subr.mxu0 %v1200_v0 }
 0x62f   :  { %v366_v45 = vpop.f32.mrf.mxu0 }
 0x630   :  { %v370_v46 = vadd.f32 %v976_v44, %v366_v45 }
 0x631   :  { %v1073_v47 = vpop.f32.mrf.mxu0 }
 0x632   :  { %1150 = vtanh.f32 %v370_v46  ;;  %v978_v49 = vmul.f32 -1.442695, %v370_v46 }
 0x634   :  { %1152 = vpow2.f32 %v978_v49 }
 0x63f   :  { %v1151_v48 = vpop.eup %1150 }
 0x640   :  { %380 = vrot.lane.b32.xlu1 %v1151_v48, %s1202_s18 }
 0x641   :  { %v1153_v50 = vpop.eup %1152 }
 0x642   :  { %v374_v51 = vadd.f32 1.0, %v1153_v50 }
 0x644   :  { %1154 = vrcp.f32 %v374_v51 }
 0x651   :  { %v1155_v52 = vpop.eup %1154 }
 0x652   :  { %v378_v55 = vmul.f32 %v1155_v52, %v279_v39  ;;  %v988_v39 = vld [vmem:[%s1423_s0 + $0x28] sm:$0xff] }
 0x6b2   :  { %v381_v53 = vpop.permute.xlu1 %380 }
 0x6b3   :  { %v383_v54 = vmul.f32 %v1155_v52, %v381_v53 }
 0x6b5   :  { %385 = vrot.lane.b32.xlu0 %v383_v54, %s1203_s19 }
 0x727   :  { %v386_v56 = vpop.permute.xlu0 %385 }
 0x728   :  { %v388_v57 = vadd.f32 %v386_v56, %v378_v55 }
 0x72a   :  { %1156 = vtanh.f32 %v388_v57 }
 0x737   :  { %v1157_v58 = vpop.eup %1156 }
 0x738   :  { %391 = vrot.lane.b32.xlu1 %v1157_v58, %s1202_s18 }
 0x7aa   :  { %v392_v59 = vpop.permute.xlu1 %391 }
 0x7ab   :  { %v394_v60 = vmul.f32 %v1155_v52, %v392_v59  ;;  %v992_v52 = vld [vmem:[%s1423_s0 + $0x30] sm:$0xff] }
 0x7ad   :  { %396 = vrot.lane.b32.xlu0 %v394_v60, %s1203_s19 }
 0x81f   :  { %v397_v61 = vpop.permute.xlu0 %396 }
 0x820   :  { %979 = vst.msk [vmem:[%s1425_s2 + $0x10] sm:$0xff] %vm13_vm0, %v397_v61  ;;  %1083 = vmatmul.mubr.msk.f32.vlgmr.msra.gmra.mxu1 %vm13_vm0, %v397_v61 }
 0x821   :  { %1097 = vmatpush3.msra.mxu1 %v1242_v4  ;;  %1104 = vmatprep.mubr.msk.f32.mxu1 %vm1201_vm1, %v1200_v0 }
 0x822   :  { %1098 = vmatprep.subr.mxu1 %v1200_v0 }
 0x823   :  { %1099 = vmatpush3.msra.mxu1 %v1237_v3 }
 0x824   :  { %1100 = vmatprep.subr.mxu1 %v1200_v0 }
 0x825   :  { %1101 = vmatpush3.msra.mxu1 %v1232_v2 }
 0x826   :  { %1102 = vmatprep.subr.mxu1 %v1200_v0 }
 0x827   :  { %1103 = vmatpush3.msra.mxu1 %v1227_v1 }
 0x828   :  { %1118 = vmatprep.subr.mxu1 %v1200_v0 }
 0x8e0   :  { %v475_v63 = vpop.f32.mrf.mxu1 }
 0x8e1   :  { %v479_v5 = vadd.f32 %v980_v62, %v475_v63 }
 0x8e2   :  { %v1084_v6 = vpop.f32.mrf.mxu1 }
 0x8e3   :  { %1158 = vtanh.f32 %v479_v5  ;;  %v982_v8 = vmul.f32 -1.442695, %v479_v5 }
 0x8e5   :  { %1160 = vpow2.f32 %v982_v8 }
 0x8f0   :  { %v1159_v7 = vpop.eup %1158 }
 0x8f1   :  { %489 = vrot.lane.b32.xlu1 %v1159_v7, %s1202_s18 }
 0x8f2   :  { %v1161_v9 = vpop.eup %1160 }
 0x8f3   :  { %v483_v10 = vadd.f32 1.0, %v1161_v9 }
 0x8f5   :  { %1162 = vrcp.f32 %v483_v10 }
 0x902   :  { %v1163_v11 = vpop.eup %1162 }
 0x903   :  { %v487_v14 = vmul.f32 %v1163_v11, %v388_v57 }
 0x963   :  { %v490_v12 = vpop.permute.xlu1 %489 }
 0x964   :  { %v492_v13 = vmul.f32 %v1163_v11, %v490_v12 }
 0x966   :  { %494 = vrot.lane.b32.xlu0 %v492_v13, %s1203_s19 }
 0x9d8   :  { %v495_v15 = vpop.permute.xlu0 %494 }
 0x9d9   :  { %v497_v16 = vadd.f32 %v495_v15, %v487_v14 }
 0x9db   :  { %1164 = vtanh.f32 %v497_v16 }
 0x9e8   :  { %v1165_v17 = vpop.eup %1164 }
 0x9e9   :  { %500 = vrot.lane.b32.xlu1 %v1165_v17, %s1202_s18 }
 0xa5b   :  { %v501_v18 = vpop.permute.xlu1 %500 }
 0xa5c   :  { %v503_v19 = vmul.f32 %v1163_v11, %v501_v18  ;;  %v996_v11 = vld [vmem:[%s1423_s0 + $0x38] sm:$0xff]  ;;  %s1204_s0 = smov 96  }
 0xa5e   :  { %505 = vrot.lane.b32.xlu0 %v503_v19, %s1203_s19 }
 0xad0   :  { %v506_v20 = vpop.permute.xlu0 %505 }
 0xad1   :  { %983 = vst.msk [vmem:[%s1425_s2 + $0x18] sm:$0xff] %vm13_vm0, %v506_v20  ;;  %1094 = vmatmul.mubr.msk.f32.vlgmr.msra.gmra.mxu0 %vm13_vm0, %v506_v20 }
 0xad2   :  { %1108 = vmatpush3.msra.mxu0 %v1242_v4  ;;  %1115 = vmatprep.mubr.msk.f32.mxu0 %vm1201_vm1, %v1200_v0 }
 0xad3   :  { %1109 = vmatprep.subr.mxu0 %v1200_v0 }
 0xad4   :  { %1110 = vmatpush3.msra.mxu0 %v1237_v3 }
 0xad5   :  { %1111 = vmatprep.subr.mxu0 %v1200_v0 }
 0xad6   :  { %1112 = vmatpush3.msra.mxu0 %v1232_v2 }
 0xad7   :  { %1113 = vmatprep.subr.mxu0 %v1200_v0 }
 0xad8   :  { %1114 = vmatpush3.msra.mxu0 %v1227_v1 }
 0xb91   :  { %v584_v22 = vpop.f32.mrf.mxu0 }
 0xb92   :  { %v588_v23 = vadd.f32 %v984_v21, %v584_v22 }
 0xb93   :  { %v1095_v24 = vpop.f32.mrf.mxu0 }
 0xb94   :  { %1166 = vtanh.f32 %v588_v23  ;;  %v986_v26 = vmul.f32 -1.442695, %v588_v23 }
 0xb96   :  { %1168 = vpow2.f32 %v986_v26 }
 0xba1   :  { %v1167_v25 = vpop.eup %1166 }
 0xba2   :  { %598 = vrot.lane.b32.xlu1 %v1167_v25, %s1202_s18 }
 0xba3   :  { %v1169_v27 = vpop.eup %1168 }
 0xba4   :  { %v592_v28 = vadd.f32 1.0, %v1169_v27 }
 0xba6   :  { %1170 = vrcp.f32 %v592_v28 }
 0xbb3   :  { %v1171_v29 = vpop.eup %1170 }
 0xbb4   :  { %v596_v32 = vmul.f32 %v1171_v29, %v497_v16 }
 0xc14   :  { %v599_v30 = vpop.permute.xlu1 %598 }
 0xc15   :  { %v601_v31 = vmul.f32 %v1171_v29, %v599_v30 }
 0xc17   :  { %603 = vrot.lane.b32.xlu0 %v601_v31, %s1203_s19 }
 0xc89   :  { %v604_v33 = vpop.permute.xlu0 %603 }
 0xc8a   :  { %v606_v34 = vadd.f32 %v604_v33, %v596_v32 }
 0xc8c   :  { %1172 = vtanh.f32 %v606_v34 }
 0xc99   :  { %v1173_v35 = vpop.eup %1172 }
 0xc9a   :  { %609 = vrot.lane.b32.xlu1 %v1173_v35, %s1202_s18 }
 0xd0c   :  { %v610_v36 = vpop.permute.xlu1 %609 }
 0xd0d   :  { %v612_v37 = vmul.f32 %v1171_v29, %v610_v36 }
 0xd0f   :  { %614 = vrot.lane.b32.xlu0 %v612_v37, %s1203_s19 }
 0xd81   :  { %v615_v38 = vpop.permute.xlu0 %614 }
 0xd82   :  { %987 = vst.msk [vmem:[%s1425_s2 + $0x20] sm:$0xff] %vm13_vm0, %v615_v38  ;;  %1105 = vmatmul.mubr.msk.f32.vlgmr.msra.gmra.mxu1 %vm13_vm0, %v615_v38 }
 0xd83   :  { %1119 = vmatpush3.msra.mxu1 %v1242_v4  ;;  %1126 = vmatprep.mubr.msk.f32.mxu1 %vm1201_vm1, %v1200_v0 }
 0xd84   :  { %1120 = vmatprep.subr.mxu1 %v1200_v0 }
 0xd85   :  { %1121 = vmatpush3.msra.mxu1 %v1237_v3 }
 0xd86   :  { %1122 = vmatprep.subr.mxu1 %v1200_v0 }
 0xd87   :  { %1123 = vmatpush3.msra.mxu1 %v1232_v2 }
 0xd88   :  { %1124 = vmatprep.subr.mxu1 %v1200_v0 }
 0xd89   :  { %1125 = vmatpush3.msra.mxu1 %v1227_v1 }
 0xe42   :  { %v693_v4 = vpop.f32.mrf.mxu1 }
 0xe43   :  { %v697_v40 = vadd.f32 %v988_v39, %v693_v4 }
 0xe44   :  { %v1106_v41 = vpop.f32.mrf.mxu1 }
 0xe45   :  { %1174 = vtanh.f32 %v697_v40  ;;  %v990_v3 = vmul.f32 -1.442695, %v697_v40 }
 0xe47   :  { %1176 = vpow2.f32 %v990_v3 }
 0xe52   :  { %v1175_v42 = vpop.eup %1174 }
 0xe53   :  { %707 = vrot.lane.b32.xlu1 %v1175_v42, %s1202_s18 }
 0xe54   :  { %v1177_v43 = vpop.eup %1176 }
 0xe55   :  { %v701_v44 = vadd.f32 1.0, %v1177_v43 }
 0xe57   :  { %1178 = vrcp.f32 %v701_v44 }
 0xe64   :  { %v1179_v2 = vpop.eup %1178 }
 0xe65   :  { %v705_v1 = vmul.f32 %v1179_v2, %v606_v34 }
 0xec5   :  { %v708_v0 = vpop.permute.xlu1 %707 }
 0xec6   :  { %v710_v45 = vmul.f32 %v1179_v2, %v708_v0 }
 0xec8   :  { %712 = vrot.lane.b32.xlu0 %v710_v45, %s1203_s19 }
 0xf3a   :  { %v713_v46 = vpop.permute.xlu0 %712 }
 0xf3b   :  { %v715_v47 = vadd.f32 %v713_v46, %v705_v1 }
 0xf3d   :  { %1180 = vtanh.f32 %v715_v47 }
 0xf4a   :  { %v1181_v48 = vpop.eup %1180 }
 0xf4b   :  { %718 = vrot.lane.b32.xlu1 %v1181_v48, %s1202_s18 }
 0xfbd   :  { %v719_v49 = vpop.permute.xlu1 %718 }
 0xfbe   :  { %v721_v50 = vmul.f32 %v1179_v2, %v719_v49 }
 0xfc0   :  { %723 = vrot.lane.b32.xlu0 %v721_v50, %s1203_s19 }
0x1032   :  { %v724_v51 = vpop.permute.xlu0 %723 }
0x1033   :  { %991 = vst.msk [vmem:[%s1425_s2 + $0x28] sm:$0xff] %vm13_vm0, %v724_v51  ;;  %1116 = vmatmul.mubr.msk.f32.vlgmr.msra.gmra.mxu0 %vm13_vm0, %v724_v51 }
0x10f3   :  { %v802_v53 = vpop.f32.mrf.mxu0 }
0x10f4   :  { %v806_v54 = vadd.f32 %v992_v52, %v802_v53 }
0x10f5   :  { %v1117_v55 = vpop.f32.mrf.mxu0 }
0x10f6   :  { %1182 = vtanh.f32 %v806_v54  ;;  %v994_v57 = vmul.f32 -1.442695, %v806_v54 }
0x10f8   :  { %1184 = vpow2.f32 %v994_v57 }
0x1103   :  { %v1183_v56 = vpop.eup %1182 }
0x1104   :  { %816 = vrot.lane.b32.xlu1 %v1183_v56, %s1202_s18 }
0x1105   :  { %v1185_v58 = vpop.eup %1184 }
0x1106   :  { %v810_v59 = vadd.f32 1.0, %v1185_v58 }
0x1108   :  { %1186 = vrcp.f32 %v810_v59 }
0x1115   :  { %v1187_v60 = vpop.eup %1186 }
0x1116   :  { %v814_v63 = vmul.f32 %v1187_v60, %v715_v47 }
0x1176   :  { %v817_v61 = vpop.permute.xlu1 %816 }
0x1177   :  { %v819_v62 = vmul.f32 %v1187_v60, %v817_v61 }
0x1179   :  { %821 = vrot.lane.b32.xlu0 %v819_v62, %s1203_s19 }
0x11eb   :  { %v822_v5 = vpop.permute.xlu0 %821 }
0x11ec   :  { %v824_v6 = vadd.f32 %v822_v5, %v814_v63 }
0x11ee   :  { %1188 = vtanh.f32 %v824_v6 }
0x11fb   :  { %v1189_v7 = vpop.eup %1188 }
0x11fc   :  { %827 = vrot.lane.b32.xlu1 %v1189_v7, %s1202_s18 }
0x126e   :  { %v828_v8 = vpop.permute.xlu1 %827 }
0x126f   :  { %v830_v9 = vmul.f32 %v1187_v60, %v828_v8 }
0x1271   :  { %832 = vrot.lane.b32.xlu0 %v830_v9, %s1203_s19 }
0x12e3   :  { %v833_v10 = vpop.permute.xlu0 %832 }
0x12e4   :  { %995 = vst.msk [vmem:[%s1425_s2 + $0x30] sm:$0xff] %vm13_vm0, %v833_v10  ;;  %1127 = vmatmul.mubr.msk.f32.vlgmr.msra.gmra.mxu1 %vm13_vm0, %v833_v10 }
0x13a4   :  { %v911_v12 = vpop.f32.mrf.mxu1 }
0x13a5   :  { %v915_v13 = vadd.f32 %v996_v11, %v911_v12 }
0x13a6   :  { %v1128_v14 = vpop.f32.mrf.mxu1 }
0x13a7   :  { %1190 = vtanh.f32 %v915_v13  ;;  %v998_v16 = vmul.f32 -1.442695, %v915_v13 }
0x13a9   :  { %1192 = vpow2.f32 %v998_v16 }
0x13b4   :  { %v1191_v15 = vpop.eup %1190 }
0x13b5   :  { %925 = vrot.lane.b32.xlu1 %v1191_v15, %s1202_s18 }
0x13b6   :  { %v1193_v17 = vpop.eup %1192 }
0x13b7   :  { %v919_v18 = vadd.f32 1.0, %v1193_v17 }
0x13b9   :  { %1194 = vrcp.f32 %v919_v18 }
0x13c6   :  { %v1195_v19 = vpop.eup %1194 }
0x13c7   :  { %v923_v22 = vmul.f32 %v1195_v19, %v824_v6 }
0x1427   :  { %v926_v20 = vpop.permute.xlu1 %925 }
0x1428   :  { %v928_v21 = vmul.f32 %v1195_v19, %v926_v20 }
0x142a   :  { %930 = vrot.lane.b32.xlu0 %v928_v21, %s1203_s19 }
0x149c   :  { %v931_v23 = vpop.permute.xlu0 %930 }
0x149d   :  { %v933_v24 = vadd.f32 %v931_v23, %v923_v22 }
0x149f   :  { %1196 = vtanh.f32 %v933_v24 }
0x14ac   :  { %v1197_v25 = vpop.eup %1196 }
0x14ad   :  { %936 = vrot.lane.b32.xlu1 %v1197_v25, %s1202_s18 }
0x14b1   :  { %948 = vrot.lane.b32.xlu1 %v933_v24, %s1204_s0 }
0x151f   :  { %v937_v26 = vpop.permute.xlu1 %936 }
0x1520   :  { %v939_v27 = vmul.f32 %v1195_v19, %v937_v26 }
0x1522   :  { %941 = vrot.lane.b32.xlu0 %v939_v27, %s1203_s19 }
0x1523   :  { %v949_v28 = vpop.permute.xlu1 %948 }
0x1524   :  { %951 = vst.msk [vmem:[#allocation4] sm:$0xff] %vm13_vm0, %v949_v28 }
0x1594   :  { %v942_v29 = vpop.permute.xlu0 %941 }
0x1595   :  { %999 = vst.msk [vmem:[%s1425_s2 + $0x38] sm:$0xff] %vm13_vm0, %v942_v29  ;;  %946 = vst.msk [vmem:[#allocation3] sm:$0xff] %vm13_vm0, %v942_v29 }
0x1596   :  { %956 = vsyncmov [#allocation5] }
0x1599   :  { %s957_s23 = vpop.sfrf %956 }
0x159a   :  { %p1000_p0 = scmp.ne.s32.totalorder %s957_s23, 0 }
0x159c   :  { %961 = shalt.err (%p1000_p0)  }

</bundles_post_ra>
